<compile_context>
chip_gen: v5e
topology: v5e:2x2
jax: 0.10.0
libtpu: 0.0.40
codegen_flags: <defaults>
</compile_context>

<pallas_src>
import jax
import jax.numpy as jnp
from jax.experimental import pallas as pl
from jax.experimental.pallas import tpu as pltpu

_LANE = 128
_TARGET_BLOCK_BYTES = 2 << 20  # ~2 MiB blocks sit on the HBM-roofline plateau (v5e/v6e/v7x)


def _drop_path_kernel(scale_ref, x_ref, o_ref):
    # scale_ref: (bb, 1) float32 VMEM -- per-sample floor(keep_prob + U) / keep_prob
    # x_ref / o_ref: (bb, tf) VMEM tile -- flattened features of bb samples
    # Broadcast multiply in f32 (promotion widens bf16/int8 x), single cast on store.
    o_ref[...] = (x_ref[...] * scale_ref[...]).astype(o_ref.dtype)


def _pick_blocks(B, feat, dtype_bytes):
    """Pick a (bb, tf) block obeying TPU tiling rules, ~_TARGET_BLOCK_BYTES in size."""
    sub_mult = max(8, 32 // dtype_bytes)  # sublane quantum: 8 f32, 16 bf16/f16, 32 int8/fp8
    # Feature (lane) block: full feat whenever it fits the budget for sub_mult rows
    # (full-extent blocks are always legal); otherwise a multiple of 128 + cdiv grid.
    cap_cols = max(_LANE, (_TARGET_BLOCK_BYTES // (sub_mult * dtype_bytes)) // _LANE * _LANE)
    tf = feat if feat <= cap_cols else cap_cols
    # Batch (sublane) block: pack as many samples as fit in the byte budget.
    rows_target = max(1, _TARGET_BLOCK_BYTES // max(1, tf * dtype_bytes))
    if B <= sub_mult or rows_target >= B:
        bb = B  # full batch dim (always legal, regardless of dtype packing)
    else:
        bb = max(sub_mult, (min(rows_target, B) // sub_mult) * sub_mult)
    return bb, tf


def drop_path(x, p, key, training=True, *, donate=False, block_rows=None, block_cols=None):
    """Stochastic-depth forward matching DropPath.forward (per-sample drop)."""
    if p is None or p == 0.0 or not training:
        return x

    keep_prob = 1.0 - float(p)
    B = x.shape[0]
    feat = 1
    for d in x.shape[1:]:
        feat *= d

    dtype_bytes = jnp.dtype(x.dtype).itemsize
    bb, tf = _pick_blocks(B, feat, dtype_bytes)
    if block_rows is not None:
        bb = block_rows
    if block_cols is not None:
        tf = block_cols

    # Contiguous reshape is a free bitcast: no pad / slice HBM round-trips.
    x2 = x.reshape(B, feat)

    # Per-sample scale computed once in float32; broadcast over lanes in-kernel.
    u = jax.random.uniform(key, (B,), dtype=jnp.float32)
    scale = (jnp.floor(jnp.float32(keep_prob) + u) / jnp.float32(keep_prob)).reshape(B, 1)

    grid = (pl.cdiv(B, bb), pl.cdiv(feat, tf))
    out = pl.pallas_call(
        _drop_path_kernel,
        out_shape=jax.ShapeDtypeStruct((B, feat), x.dtype),
        grid=grid,
        in_specs=[
            pl.BlockSpec((bb, 1), lambda b, f: (b, 0)),    # scale (broadcast over feat blocks)
            pl.BlockSpec((bb, tf), lambda b, f: (b, f)),   # x tile
        ],
        out_specs=pl.BlockSpec((bb, tf), lambda b, f: (b, f)),
        # Donation is opt-in: if x2 is a view of a still-live caller array, XLA
        # would insert a defensive copy that erases the benefit.
        input_output_aliases=({1: 0} if donate else {}),
        cost_estimate=pl.CostEstimate(
            flops=B * feat,
            transcendentals=0,
            bytes_accessed=2 * B * feat * dtype_bytes + B * 4,
        ),
        compiler_params=pltpu.CompilerParams(
            dimension_semantics=("parallel", "parallel"),
            vmem_limit_bytes=32 * 1024 * 1024,
        ),
    )(scale, x2)

    return out.reshape(x.shape)


def _drop_path_ref(x, p, key, training=True):
    """Pure-JAX reference mirroring the PyTorch forward."""
    if p is None or p == 0.0 or not training:
        return x
    keep_prob = 1.0 - float(p)
    B = x.shape[0]
    shape = (B,) + (1,) * (x.ndim - 1)
    u = jax.random.uniform(key, (B,), dtype=jnp.float32).reshape(shape)
    mask = jnp.floor(keep_prob + u)
    return ((x.astype(jnp.float32) / keep_prob) * mask).astype(x.dtype)


if __name__ == "__main__":
    key = jax.random.PRNGKey(0)
    kx, kmask = jax.random.split(key)
    p = 0.2

    # Small NCHW input consistent with the module: batch=2, channels=4, 16x16.
    x = jax.random.normal(kx, (2, 4, 16, 16), dtype=jnp.float32)
    out = jax.block_until_ready(drop_path(x, p, kmask, training=True))
    ref = _drop_path_ref(x, p, kmask, training=True)
    assert out.shape == x.shape and out.dtype == x.dtype
    assert jnp.allclose(out, ref, atol=1e-6, rtol=1e-5)

    # Feature size NOT a multiple of 128: handled with a full-extent lane block
    # (no pad / slice copies anywhere).
    x_odd = jax.random.normal(kx, (2, 3, 5, 7), dtype=jnp.float32)
    out_odd = jax.block_until_ready(drop_path(x_odd, p, kmask, training=True))
    ref_odd = _drop_path_ref(x_odd, p, kmask, training=True)
    assert out_odd.shape == x_odd.shape
    assert jnp.allclose(out_odd, ref_odd, atol=1e-6, rtol=1e-5)

    # Multi-block grid with a ragged final batch block (forced small blocks).
    x_big = jax.random.normal(kx, (10, 4, 16, 16), dtype=jnp.float32)
    out_big = jax.block_until_ready(
        drop_path(x_big, p, kmask, training=True, block_rows=8, block_cols=256))
    ref_big = _drop_path_ref(x_big, p, kmask, training=True)
    assert jnp.allclose(out_big, ref_big, atol=1e-6, rtol=1e-5)

    # bf16 path (16-sublane quantum; small batch uses a full-dim block).
    x_bf = jax.random.normal(kx, (2, 4, 16, 16), dtype=jnp.bfloat16)
    out_bf = jax.block_until_ready(drop_path(x_bf, p, kmask, training=True))
    ref_bf = _drop_path_ref(x_bf, p, kmask, training=True)
    assert out_bf.dtype == jnp.bfloat16
    assert jnp.allclose(out_bf.astype(jnp.float32), ref_bf.astype(jnp.float32),
                        atol=1e-2, rtol=1e-2)

    # Eval mode / p == 0 are identity passthroughs.
    assert jnp.array_equal(drop_path(x, p, kmask, training=False), x)
    assert jnp.array_equal(drop_path(x, 0.0, kmask, training=True), x)

    print("KERNEL_OK")
</pallas_src>

<mosaic_0001>
module attributes {stable_mosaic.version = 11 : i64} {
  func.func @_drop_path_kernel(%arg0: i32, %arg1: i32, %arg2: memref<2x1xf32, #tpu.memory_space<vmem>>, %arg3: memref<2x1024xf32, #tpu.memory_space<vmem>>, %arg4: memref<2x1024xf32, #tpu.memory_space<vmem>>) attributes {dimension_semantics = [#tpu.dimension_semantics<parallel>, #tpu.dimension_semantics<parallel>], iteration_bounds = array<i64: 1, 1>, scalar_prefetch = 0 : i64, scratch_operands = 0 : i64, tpu.core_type = #tpu.core_type<tc>, window_params = [{transform_indices = @transform_0, window_bounds = array<i64: 2, 1>}, {transform_indices = @transform_1, window_bounds = array<i64: 2, 1024>}, {transform_indices = @transform_2, window_bounds = array<i64: 2, 1024>}]} {
    %c0 = arith.constant 0 : index
    %c0_0 = arith.constant 0 : index
    %0 = vector.load %arg3[%c0, %c0_0] : memref<2x1024xf32, #tpu.memory_space<vmem>>, vector<2x1024xf32>
    %c0_1 = arith.constant 0 : index
    %c0_2 = arith.constant 0 : index
    %1 = vector.load %arg2[%c0_1, %c0_2] : memref<2x1xf32, #tpu.memory_space<vmem>>, vector<2x1xf32>
    %2 = vector.broadcast %1 : vector<2x1xf32> to vector<2x1024xf32>
    %3 = arith.mulf %0, %2 : vector<2x1024xf32>
    %c0_3 = arith.constant 0 : index
    %c0_4 = arith.constant 0 : index
    %4 = vector.load %arg4[%c0_3, %c0_4] : memref<2x1024xf32, #tpu.memory_space<vmem>>, vector<2x1024xf32>
    tpu.vector_store %arg4[%c0_3, %c0_4], %3 {strides = array<i32>} : memref<2x1024xf32, #tpu.memory_space<vmem>>, vector<2x1024xf32>,
    return
  }
  func.func @transform_0(%arg0: i32, %arg1: i32) -> (i32, i32) {
    %c0_i32 = arith.constant 0 : i32
    %c0_i32_0 = arith.constant 0 : i32
    return %arg0, %c0_i32 : i32, i32
  }
  func.func @transform_1(%arg0: i32, %arg1: i32) -> (i32, i32) {
    %c0_i32 = arith.constant 0 : i32
    return %arg0, %arg1 : i32, i32
  }
  func.func @transform_2(%arg0: i32, %arg1: i32) -> (i32, i32) {
    %c0_i32 = arith.constant 0 : i32
    return %arg0, %arg1 : i32, i32
  }
}

</mosaic_0001>

<bundles_post_ra>
// kernel: tpu_custom_call.1
= control target key start
LH: loop header
LB: loop body
LE: loop exit
PB: predicated region body
PF: predicated region fallthrough
CT: control target
= control target key end

     0   :  { %7 = vsyncpa [#allocation3], 0  ;;  %s144_s0 = inlined_call_operand.vmem [shape: f32[2,1], index: 0, kind: input, shape index: {}]   ;;  %s145_s1 = inlined_call_operand.hbm [shape: f32[2,1024], index: 1, kind: input, shape index: {}]   ;;  %s146_s2 = inlined_call_operand.hbm [shape: f32[2,1024], index: 2, kind: output, shape index: {}]  }
   0x1   :  { %8 = vsyncpa [#allocation4], 0  ;;  %s16_s11 = sshll.u32 %s145_s1, 4  ;;  %s116_s12 = smov [#allocation2]   ;;  %s17_s11 = int_to_ptr.hbm [resolvable:$true] %s16_s11 }
   0x2   :  { %s18_s13 = sshll.u32 %s116_s12, 4  ;;  %s19_s13 = int_to_ptr.vmem [resolvable:$true] %s18_s13 }
   0x3   :  { %21 = dma.hbm_to_vmem [thread:$0]  %s17_s11, 256, %s19_s13, [#allocation3]  }
   0x4   :  { %112 = dma.done.wait [#allocation3], 256  }
   0x5   :  { %113 = vsyncadd [#allocation3], 4294967040  ;;  %v117_v0 = vmov 0   ;;  %v28_v1 = vld [vmem:[%s144_s0] sm:$0x3]  ;;  %v27_v7 = vld [vmem:[#allocation2 + $0x8] sm:$0xff] }
   0x6   :  { %63 = vset.pattern.permute.xlu0 %v117_v0  ;;  %v118_v2 = vmov 269488144   ;;  %v26_v6 = vld [vmem:[#allocation2] sm:$0xff]  ;;  %s119_s1 = smov [#allocation5]   ;;  %s49_s19 = sshll.u32 %s146_s2, 4  ;;  %s50_s19 = int_to_ptr.hbm [resolvable:$true] %s49_s19 }
   0x7   :  { %31 = vperm.xlu0 %63, %v28_v1   ;;  %v34_v3 = vunpack.c.l.s4 %v118_v2  ;;  %s47_s16 = sshll.u32 %s119_s1, 4  ;;  %s48_s16 = int_to_ptr.vmem [resolvable:$true] %s47_s16 }
   0x9   :  { %v35_v4 = vunpack.c.0.s8 %v34_v3 }
  0x79   :  { %v32_v5 = vpop.permute.xlu0 %31 }
  0x7a   :  { %v36_v8 = vperm.slane %v32_v5, %v35_v4 }
  0x7c   :  { %v38_v9 = vmul.f32 %v36_v8, %v26_v6  ;;  %v39_v10 = vmul.f32 %v36_v8, %v27_v7 }
  0x7e   :  { %40 = vst [vmem:[#allocation5] sm:$0xff] %v38_v9 }
  0x7f   :  { %41 = vst [vmem:[#allocation5 + $0x8] sm:$0xff] %v39_v10 }
  0x80   :  { %52 = dma.vmem_to_hbm [thread:$0]  %s48_s16, 256, %s50_s19, [#allocation4]  }
  0x81   :  { %114 = dma.done.wait [#allocation4], 256  }
  0x82   :  { %115 = vsyncadd [#allocation4], 4294967040 }
  0x83   :  { %57 = vsyncpa [#allocation3], 1 }
  0x84   :  { %58 = vsyncpa [#allocation4], 1 }

</bundles_post_ra>
